<compile_context>
chip_gen: v5e
topology: v5e:2x2
jax: 0.10.0
libtpu: 0.0.40
codegen_flags: <defaults>
</compile_context>

<pallas_src>
import jax
import jax.numpy as jnp
import numpy as np
from jax.experimental import pallas as pl
from jax.experimental.pallas import tpu as pltpu


# ---------------------------------------------------------------------------
# Pallas kernel: one (C_in, TN) slab of one batch -> ReLU(W @ x + b) slab.
# ---------------------------------------------------------------------------
def _conv_bn_relu_kernel(x_ref, w_ref, b_ref, o_ref):
    # x_ref: (1, C_in, TN) input dtype; w_ref: (C_out, C_in) bf16;
    # b_ref: (C_out, 1) f32; o_ref: (1, C_out, TN) bf16.
    x = x_ref[0].astype(jnp.bfloat16)                           # (C_in, TN)
    y = jnp.dot(w_ref[...], x,
                preferred_element_type=jnp.float32)             # (C_out, TN) f32
    y = jnp.maximum(y + b_ref[...], 0.0)                        # bias + ReLU (f32)
    o_ref[0] = y.astype(o_ref.dtype)                            # bf16 store


def conv_bn_relu_1d_pallas(x, w_eff_bf16, b_eff, *, tn=512):
    """x: [B, C_in, N] -> [B, C_out, N] (Conv1d k=1 + BN(eval) + ReLU), bf16 out."""
    B, Cin, N = x.shape
    Cout = w_eff_bf16.shape[0]

    tn = min(tn, N)                       # lane-dense tile; full N if small
    n_tiles = pl.cdiv(N, tn)              # overhanging last tile is masked on store

    return pl.pallas_call(
        _conv_bn_relu_kernel,
        out_shape=jax.ShapeDtypeStruct((B, Cout, N), jnp.bfloat16),
        grid_spec=pltpu.PrefetchScalarGridSpec(
            num_scalar_prefetch=0,
            grid=(B, n_tiles),
            in_specs=[
                pl.BlockSpec((1, Cin, tn), lambda b, j: (b, 0, j)),   # x slab
                pl.BlockSpec((Cout, Cin), lambda b, j: (0, 0)),       # W_eff (resident)
                pl.BlockSpec((Cout, 1), lambda b, j: (0, 0)),         # b_eff (resident)
            ],
            out_specs=pl.BlockSpec((1, Cout, tn), lambda b, j: (b, 0, j)),
        ),
        compiler_params=pltpu.CompilerParams(
            dimension_semantics=("parallel", "parallel"),
            vmem_limit_bytes=32 * 1024 * 1024,
        ),
    )(x, w_eff_bf16, b_eff)


# ---------------------------------------------------------------------------
# Parameter construction: Conv1d(k=1, bias=True) + BatchNorm1d (eval) folded.
# ---------------------------------------------------------------------------
def make_params(key, c_in, c_out, eps=1e-5):
    kw, kb, kg, kbeta, km, kv = jax.random.split(key, 6)
    w = jax.random.normal(kw, (c_out, c_in), jnp.float32) * 0.1
    b = jax.random.normal(kb, (c_out,), jnp.float32) * 0.1
    gamma = 1.0 + 0.1 * jax.random.normal(kg, (c_out,), jnp.float32)
    beta = 0.1 * jax.random.normal(kbeta, (c_out,), jnp.float32)
    mean = 0.1 * jax.random.normal(km, (c_out,), jnp.float32)
    var = 0.5 + jax.random.uniform(kv, (c_out,), jnp.float32)
    scale = gamma / jnp.sqrt(var + eps)
    w_eff = w * scale[:, None]                       # [C_out, C_in]
    b_eff = scale * (b - mean) + beta                # [C_out]
    # Weights bf16 (MXU-native operand), bias f32, bias shaped for broadcast.
    return w_eff.astype(jnp.bfloat16), b_eff[:, None].astype(jnp.float32)
    # TODO(synk): training-mode BatchNorm (batch statistics) and the non-ReLU
    # activation variants of get_activation are not implemented; this is the
    # default eval-mode BN + ReLU path folded into the conv.


# ---------------------------------------------------------------------------
# Pure-JAX reference (same bf16 operands, f32 accumulation, bf16 output).
# ---------------------------------------------------------------------------
def conv_bn_relu_1d_ref(x, w_eff_bf16, b_eff):
    xb = x.astype(jnp.bfloat16)                                      # [B, C_in, N]
    y = jnp.einsum('oc,bcn->bon', w_eff_bf16, xb,
                   preferred_element_type=jnp.float32)               # [B, C_out, N]
    y = jnp.maximum(y + b_eff[None, :, :], 0.0)
    return y.astype(jnp.bfloat16)


if __name__ == "__main__":
    # Small-but-representative shapes: C_out=128 (one MXU tile / full sublane
    # stack), N=1024 with TN=512 -> grid (2, 2) = 4 parallel steps.
    B, C_in, N = 2, 16, 1024
    C_out = 128

    key = jax.random.PRNGKey(0)
    kx, kp = jax.random.split(key)
    x = jax.random.normal(kx, (B, C_in, N), jnp.float32)
    w_eff, b_eff = make_params(kp, C_in, C_out)

    out = conv_bn_relu_1d_pallas(x, w_eff, b_eff, tn=512)
    jax.block_until_ready(out)

    ref = conv_bn_relu_1d_ref(x, w_eff, b_eff)
    np.testing.assert_allclose(np.asarray(out, dtype=np.float32),
                               np.asarray(ref, dtype=np.float32),
                               rtol=2e-2, atol=2e-2)
    assert out.shape == (B, C_out, N)
    print("KERNEL_OK")
</pallas_src>

<mosaic_0001>
module attributes {stable_mosaic.version = 11 : i64} {
  func.func @_conv_bn_relu_kernel(%arg0: i32, %arg1: i32, %arg2: memref<1x16x512xf32, #tpu.memory_space<vmem>>, %arg3: memref<128x16xbf16, #tpu.memory_space<vmem>>, %arg4: memref<128x1xf32, #tpu.memory_space<vmem>>, %arg5: memref<1x128x512xbf16, #tpu.memory_space<vmem>>) attributes {dimension_semantics = [#tpu.dimension_semantics<parallel>, #tpu.dimension_semantics<parallel>], iteration_bounds = array<i64: 2, 2>, scalar_prefetch = 0 : i64, scratch_operands = 0 : i64, tpu.core_type = #tpu.core_type<tc>, window_params = [{transform_indices = @transform_0, window_bounds = array<i64: 1, 16, 512>}, {pipeline_mode = #tpu.pipeline_mode<synchronous>, transform_indices = @transform_1, window_bounds = array<i64: 128, 16>}, {pipeline_mode = #tpu.pipeline_mode<synchronous>, transform_indices = @transform_2, window_bounds = array<i64: 128, 1>}, {transform_indices = @transform_3, window_bounds = array<i64: 1, 128, 512>}]} {
    %c0 = arith.constant 0 : index
    %c0_0 = arith.constant 0 : index
    %c0_1 = arith.constant 0 : index
    %0 = vector.load %arg2[%c0, %c0_0, %c0_1] : memref<1x16x512xf32, #tpu.memory_space<vmem>>, vector<1x16x512xf32>
    %1 = vector.shape_cast %0 : vector<1x16x512xf32> to vector<16x512xf32>
    %2 = arith.truncf %1 : vector<16x512xf32> to vector<16x512xbf16>
    %c0_2 = arith.constant 0 : index
    %c0_3 = arith.constant 0 : index
    %3 = vector.load %arg3[%c0_2, %c0_3] : memref<128x16xbf16, #tpu.memory_space<vmem>>, vector<128x16xbf16>
    %cst = arith.constant dense<0.000000e+00> : vector<128x512xf32>
    %4 = tpu.matmul %3, %2, %cst {dimension_numbers = #tpu.dot_dimension_numbers<[1], [0], [0], [1], [0, 0, 1, 1], [], []>} : vector<128x16xbf16>, vector<16x512xbf16>, vector<128x512xf32> -> vector<128x512xf32>
    %c0_4 = arith.constant 0 : index
    %c0_5 = arith.constant 0 : index
    %5 = vector.load %arg4[%c0_4, %c0_5] : memref<128x1xf32, #tpu.memory_space<vmem>>, vector<128x1xf32>
    %6 = vector.broadcast %5 : vector<128x1xf32> to vector<128x512xf32>
    %7 = arith.addf %4, %6 : vector<128x512xf32>
    %cst_6 = arith.constant 0.000000e+00 : f32
    %8 = vector.broadcast %cst_6 : f32 to vector<128x512xf32>
    %9 = arith.maximumf %7, %8 : vector<128x512xf32>
    %10 = arith.truncf %9 : vector<128x512xf32> to vector<128x512xbf16>
    %c0_7 = arith.constant 0 : index
    %c0_8 = arith.constant 0 : index
    %c0_9 = arith.constant 0 : index
    %11 = vector.load %arg5[%c0_7, %c0_8, %c0_9] : memref<1x128x512xbf16, #tpu.memory_space<vmem>>, vector<1x128x512xbf16>
    %12 = vector.shape_cast %11 : vector<1x128x512xbf16> to vector<128x512xbf16>
    %13 = vector.shape_cast %10 : vector<128x512xbf16> to vector<1x128x512xbf16>
    tpu.vector_store %arg5[%c0_7, %c0_8, %c0_9], %13 {strides = array<i32>} : memref<1x128x512xbf16, #tpu.memory_space<vmem>>, vector<1x128x512xbf16>,
    return
  }
  func.func @transform_0(%arg0: i32, %arg1: i32) -> (i32, i32, i32) {
    %c0_i32 = arith.constant 0 : i32
    %c0_i32_0 = arith.constant 0 : i32
    return %arg0, %c0_i32, %arg1 : i32, i32, i32
  }
  func.func @transform_1(%arg0: i32, %arg1: i32) -> (i32, i32) {
    %c0_i32 = arith.constant 0 : i32
    %c0_i32_0 = arith.constant 0 : i32
    %c0_i32_1 = arith.constant 0 : i32
    return %c0_i32, %c0_i32_0 : i32, i32
  }
  func.func @transform_2(%arg0: i32, %arg1: i32) -> (i32, i32) {
    %c0_i32 = arith.constant 0 : i32
    %c0_i32_0 = arith.constant 0 : i32
    %c0_i32_1 = arith.constant 0 : i32
    return %c0_i32, %c0_i32_0 : i32, i32
  }
  func.func @transform_3(%arg0: i32, %arg1: i32) -> (i32, i32, i32) {
    %c0_i32 = arith.constant 0 : i32
    %c0_i32_0 = arith.constant 0 : i32
    return %arg0, %c0_i32, %arg1 : i32, i32, i32
  }
}

</mosaic_0001>

<bundles_post_ra>
// kernel: tpu_custom_call.1
= control target key start
LH: loop header
LB: loop body
LE: loop exit
PB: predicated region body
PF: predicated region fallthrough
CT: control target
= control target key end

     0   :  { %8 = vsyncpa [#allocation3], 0  ;;  %s1449_s0 = inlined_call_operand.hbm [shape: f32[2,16,1024], index: 0, kind: input, shape index: {}]   ;;  %s1450_s1 = inlined_call_operand.vmem [shape: bf16[128,16], index: 1, kind: input, shape index: {}]   ;;  %s1451_s2 = inlined_call_operand.vmem [shape: f32[128,1], index: 2, kind: input, shape index: {}]   ;;  %s1452_s3 = inlined_call_operand.hbm [shape: bf16[2,128,1024], index: 3, kind: output, shape index: {}]  }
   0x1   :  { %10 = vsyncpa [#allocation3 + $0x1], 0 }
   0x2   :  { %11 = vsyncpa [#allocation4], 0 }
   0x3   :  { %13 = vsyncpa [#allocation4 + $0x1], 0  ;;  %s1167_s12 = smov 0   ;;  %s1169_s13 = smov 0  }
   0x4   :  { %s1171_s14 = smov 0   ;;  %s1173_s15 = smov 0  }
   0x5   :  { %s1175_s16 = smov 0   ;;  %s1177_s17 = smov 0  }
   0x6   :  { %s1179_s18 = smov 0   ;;  %s1181_s19 = smov 0  }
   0x7 LB: > { %1456 = sst [smem:[#allocation8_spill]] %s1130_s17  ;;  %s833_s20 = sadd.s32 4294967295, %s1138_s19   ;;  %s1138_s19 = sphi %s1181_s19, %s19_s19   ;;  %s1134_s18 = sphi %s1179_s18, %s1472_s18   ;;  %s1130_s17 = sphi %s1177_s17, %s1466_s17   ;;  %s1126_s16 = sphi %s1175_s16, %s1471_s16   ;;  %s1122_s15 = sphi %s1173_s15, %s1465_s15   ;;  %s1118_s14 = sphi %s1171_s14, %s1470_s14   ;;  %s1114_s13 = sphi %s1169_s13, %s1469_s13   ;;  %s1110_s12 = sphi %s1167_s12, %s1468_s12  }
   0x8   : > { %s834_s21 = sadd.s32 4294967294, %s1138_s19   ;;  %s28_s22 = sadd.s32 1, %s1130_s17 }
   0x9   : > { %s31_s23 = sadd.s32 1, %s1134_s18  ;;  %p29_p0 = scmp.ge.s32.totalorder %s28_s22, 2 }
   0xa   : > { %s40_s24 = sadd.s32 1, %s1118_s14  ;;  %p47_p1 = scmp.ne.s32.totalorder %s1118_s14, %s1114_s13 }
   0xb   : > { %p48_p2 = scmp.eq.s32.totalorder %s1138_s19, 0  ;;  %s1474_s22 = smov (%p29_p0, %s28_s22), 0 }
   0xc   : > { %1457 = sst [smem:[#allocation9_spill]] %s1474_s22  ;;  %s1476_s23 = smov (!%p29_p0, %s31_s23), %s1134_s18 }
   0xd   : > { %s36_s25 = ssub.s32 %s1130_s17, %s1474_s22  ;;  %p1220_p3 = por %p48_p2, %p47_p1 }
   0xe   : > { %p33_p4 = scmp.ge.s32.totalorder %s1476_s23, 2  ;;  %p53_p5 = scmp.ne.s32.totalorder %s1114_s13, %s1110_s12 }
   0xf   : > { %p54_p6 = scmp.eq.s32.totalorder %s833_s20, 0  ;;  %p121_p7 = scmp.eq.s32.totalorder %s833_s20, 3 }
  0x10   : > { %s1478_s23 = smov (%p33_p4, %s1476_s23), 0  ;;  %p127_p10 = scmp.eq.s32.totalorder %s834_s21, 3 }
  0x11   : > { %1459 = sst [smem:[#allocation10_spill]] %s1478_s23  ;;  %p1228_p8 = por %p54_p6, %p53_p5 }
  0x12   : > { %p1232_p9 = por %p121_p7, %p47_p1  ;;  %s35_s29 = ssub.s32 %s1134_s18, %s1478_s23 }
  0x13   : > { %s37_s30 = sor.u32 %s36_s25, %s35_s29  ;;  %p1238_p12 = por %p127_p10, %p53_p5 }
  0x14   : > { %p38_p11 = scmp.eq.s32.totalorder %s37_s30, 0  ;;  %p934_p13 = scmp.lt.s32.totalorder %s1138_s19, 4 }
  0x15   : > { %s153_s5 = sand.u32 1, %s1118_s14   ;;  %s838_s8 = sshll.u32 %s1130_s17, 2 }
  0x16   : > { %s1245_s6 = scalar_select %p38_p11, %s1118_s14, %s40_s24  }
  0x17   : > { %s837_s7 = sshll.u32 %s153_s5, 6  ;;  %s839_s9 = sshll.u32 %s1134_s18, 4 }
  0x18   : > { %1463 = sst [smem:[#allocation11_spill]] %s1245_s6  ;;  %s157_s10 = scalar_lea.vmem [#allocation2], %s837_s7 }
  0x19   : > { %s167_s11 = sshll.u32 %s157_s10, 4  ;;  %s162_s20 = sadd.s32 %s839_s9, %s838_s8  ;;  %s168_s11 = int_to_ptr.vmem [resolvable:$true] %s167_s11 }
  0x1a   : > { %s840_s21 = sshll.u32 %s162_s20, 3  ;;  %p927_p0 = pnand %p934_p13, %p1220_p3 }
  0x1b   : > { %s164_s30 = scalar_lea.hbm %s1449_s0, %s840_s21  ;;  %p841_p1 = scmp.ge.s32.totalorder %s1138_s19, 1 }
  0x1c   : > { %s165_s23 = sshll.u32 %s164_s30, 4  ;;  %s154_s24 = scalar_lea.sflag [#allocation3], %s153_s5  ;;  %s166_s23 = int_to_ptr.hbm [resolvable:$true] %s165_s23 }
  0x1d   : > { %s1140_s22 = smov 1024   ;;  %s1141_s6 = smov 512  }
  0x1e   : > { %s1142_s17 = smov 32   ;;  %p175_p2 = scmp.lt.s32.totalorder %s1138_s19, 5 }
  0x1f   : > { %929 = dma.hbm_to_vmem [thread:$0]  (!%p927_p0), %s166_s23, 1024, %s168_s11, %s154_s24, %s1140_s22, %s1141_s6, %s1142_s17  }
  0x20   : > { %p176_p4 = pnand %p841_p1, %p175_p2 }
  0x21   : > { %s1257_s7 = sand.u32 (!%p176_p4), 1, %s1114_s13  }
  0x22   : > { %179 = sbr.rel (%p176_p4) target bundleno = 312 (0x138), region = 32  ;;  %s842_s26 = sshll.u32 (!%p176_p4), %s1257_s7, 6 }
  0x23   : > { %s182_s8 = scalar_lea.sflag (!%p176_p4), [#allocation3], %s1257_s7  ;;  %s185_s9 = scalar_lea.vmem (!%p176_p4), [#allocation2], %s842_s26 }
  0x27   : > { %1101 = dma.done.wait (%p1228_p8), %s182_s8, 1024  }
  0x28   : > { %1103 = vsyncadd (%p1228_p8), %s182_s8, 4294966272  ;;  %v1143_v0 = vmov 0   ;;  %v212_v1 = vld [vmem:[%s185_s9] sm:$0xff]  ;;  %v213_v3 = vld [vmem:[%s185_s9 + $0x8] sm:$0xff]  ;;  %vm376_vm0 = vcmask 130048   ;;  %s843_s26 = sshll.u32 %s1257_s7, 8 }
  0x29   : > { %1007 = vset.pattern.permute.xlu0 %v1143_v0  ;;  %1008 = vset.pattern.permute.xlu1 %v1143_v0  ;;  %v216_v2 = vld [vmem:[%s185_s9 + $0x20] sm:$0xff]  ;;  %v217_v5 = vld [vmem:[%s185_s9 + $0x28] sm:$0xff]  ;;  %v214_v6 = vld [vmem:[%s185_s9 + $0x10] sm:$0xff]  ;;  %s1370_s8 = scalar_lea.vmem [#allocation5], %s843_s26  ;;  %s910_s17 = sshll.u32 %s1126_s16, 7 }
  0x2a   : > { %1009 = vset.pattern.permute.xlu2 %v1143_v0  ;;  %v220_v4 = vpack.c.bf16 %v216_v2, %v212_v1  ;;  %v218_v7 = vld [vmem:[%s185_s9 + $0x30] sm:$0xff]  ;;  %v221_v8 = vpack.c.bf16 %v217_v5, %v213_v3  ;;  %v215_v10 = vld [vmem:[%s185_s9 + $0x18] sm:$0xff]  ;;  %v914_v12 = vld [vmem:[%s1450_s1] sm:$0xff]  ;;  %s740_s5 = sshll.u32 %s1370_s8, 4  ;;  %s726_s10 = scalar_lea.sflag [#allocation4], %s1257_s7  ;;  %s741_s5 = int_to_ptr.vmem [resolvable:$true] %s740_s5 }
  0x2b   : > { %v222_v9 = vpack.c.bf16 %v218_v7, %v214_v6  ;;  %v219_v11 = vld [vmem:[%s185_s9 + $0x38] sm:$0xff]  ;;  %v240_v14 = vld [vmem:[%s1451_s2] sm:$0xff]  ;;  %v242_v15 = vld [vmem:[%s1451_s2 + $0x10] sm:$0xff]  ;;  %s909_s9 = sshll.u32 %s1122_s15, 2  ;;  %s1060_s29 = scalar_lea.hbm %s1452_s3, 1024 }
  0x2c   : > { %408 = vmatpush.bf16.msra.mxu0 %v220_v4  ;;  %v223_v13 = vpack.c.bf16 %v219_v11, %v215_v10  ;;  %457 = vmatpush.bf16.msra.mxu1 %v221_v8  ;;  %v241_v16 = vld [vmem:[%s1451_s2 + $0x8] sm:$0xff]  ;;  %v243_v17 = vld [vmem:[%s1451_s2 + $0x18] sm:$0xff]  ;;  %v916_v19 = vld [vmem:[%s1450_s1 + $0x10] sm:$0xff]  ;;  %s737_s22 = sadd.s32 %s910_s17, %s909_s9 }
  0x2d   : > { %506 = vmatpush.bf16.msra.mxu2 %v222_v9  ;;  %258 = vperm.xlu0 %1007, %v240_v14   ;;  %v915_v18 = vld [vmem:[%s1450_s1 + $0x8] sm:$0xff]  ;;  %v246_v20 = vld [vmem:[%s1451_s2 + $0x30] sm:$0xff]  ;;  %v244_v21 = vld [vmem:[%s1451_s2 + $0x20] sm:$0xff]  ;;  %s911_s15 = sshll.u32 %s737_s22, 2 }
  0x2e   : > { %555 = vmatpush.bf16.msra.mxu3 %v223_v13  ;;  %268 = vperm.xlu1 %1008, %v242_v15   ;;  %v247_v22 = vld [vmem:[%s1451_s2 + $0x38] sm:$0xff]  ;;  %v245_v23 = vld [vmem:[%s1451_s2 + $0x28] sm:$0xff]  ;;  %v252_v26 = vld [vmem:[%s1451_s2 + $0x60] sm:$0xff]  ;;  %s739_s27 = scalar_lea.hbm %s1452_s3, %s911_s15 }
  0x2f   : > { %876 = vmatmul.msk.bf16.vlgmr.msra.gmra.mxu0 %vm376_vm0, %v914_v12  ;;  %884 = vmatmul.msk.bf16.vlgmr.msra.gmra.mxu1 %vm376_vm0, %v914_v12  ;;  %v917_v24 = vld [vmem:[%s1450_s1 + $0x18] sm:$0xff]  ;;  %v249_v25 = vld [vmem:[%s1451_s2 + $0x48] sm:$0xff]  ;;  %v918_v27 = vld [vmem:[%s1450_s1 + $0x20] sm:$0xff]  ;;  %s742_s6 = sshll.u32 %s739_s27, 4  ;;  %s743_s6 = int_to_ptr.hbm [resolvable:$true] %s742_s6 }
  0x30   : > { %892 = vmatmul.msk.bf16.vlgmr.msra.gmra.mxu2 %vm376_vm0, %v914_v12  ;;  %278 = vperm.xlu2 %1009, %v244_v21   ;;  %v250_v28 = vld [vmem:[%s1451_s2 + $0x50] sm:$0xff]  ;;  %v255_v29 = vld [vmem:[%s1451_s2 + $0x78] sm:$0xff]  ;;  %v248_v30 = vld [vmem:[%s1451_s2 + $0x40] sm:$0xff]  ;;  %s1054_s11 = sshra.s32 %s743_s6, 4  ;;  %s1055_s11 = int_to_ptr.hbm [resolvable:$true] %s1054_s11 }
  0x31   : > { %900 = vmatmul.msk.bf16.vlgmr.msra.gmra.mxu3 %vm376_vm0, %v914_v12  ;;  %v253_v31 = vld [vmem:[%s1451_s2 + $0x68] sm:$0xff]  ;;  %v251_v33 = vld [vmem:[%s1451_s2 + $0x58] sm:$0xff]  ;;  %v920_v34 = vld [vmem:[%s1450_s1 + $0x30] sm:$0xff]  ;;  %s1056_s20 = scalar_lea.hbm %s1055_s11, 256  ;;  %p1061_p7 = scmp.lt.s32.totalorder %s1055_s11, %s1452_s3 }
  0x32   : > { %v919_v32 = vld [vmem:[%s1450_s1 + $0x28] sm:$0xff]  ;;  %v254_v35 = vld [vmem:[%s1451_s2 + $0x70] sm:$0xff]  ;;  %v921_v36 = vld [vmem:[%s1450_s1 + $0x38] sm:$0xff]  ;;  %p1057_p3 = scmp.ne.s32.totalorder %s1055_s11, %s1056_s20  ;;  %p1062_p8 = scmp.lt.s32.totalorder %s1060_s29, %s1056_s20 }
  0x34   : > { %p1058_p5 = pnand %p1057_p3, %p1232_p9  ;;  %p1063_p10 = por %p1062_p8, %p1061_p7 }
  0x35   : > { %263 = vperm.xlu0 %1007, %v241_v16  }
  0x36   : > { %273 = vperm.xlu1 %1008, %v243_v17   ;;  %p1059_p6 = pneg %p1058_p5 }
  0x38   : > { %283 = vperm.xlu2 %1009, %v245_v23   ;;  %p1064_p11 = pnand %p1063_p10, %p1059_p6 }
  0x3d   : > { %288 = vperm.xlu0 %1007, %v246_v20  }
  0x3e   : > { %293 = vperm.xlu1 %1008, %v247_v22  }
  0x3f   : > { %877 = vmatmul.msk.bf16.gmra.mxu0 %vm376_vm0, %v915_v18  ;;  %885 = vmatmul.msk.bf16.gmra.mxu1 %vm376_vm0, %v915_v18 }
  0x40   : > { %893 = vmatmul.msk.bf16.gmra.mxu2 %vm376_vm0, %v915_v18  ;;  %298 = vperm.xlu2 %1009, %v248_v30  }
  0x41   : > { %901 = vmatmul.msk.bf16.gmra.mxu3 %vm376_vm0, %v915_v18 }
  0x45   : > { %303 = vperm.xlu0 %1007, %v249_v25  }
  0x46   : > { %308 = vperm.xlu1 %1008, %v250_v28  }
  0x48   : > { %313 = vperm.xlu2 %1009, %v251_v33  }
  0x4d   : > { %318 = vperm.xlu0 %1007, %v252_v26  }
  0x4e   : > { %323 = vperm.xlu1 %1008, %v253_v31  }
  0x4f   : > { %878 = vmatmul.msk.bf16.gmra.mxu0 %vm376_vm0, %v916_v19  ;;  %886 = vmatmul.msk.bf16.gmra.mxu1 %vm376_vm0, %v916_v19 }
  0x50   : > { %894 = vmatmul.msk.bf16.gmra.mxu2 %vm376_vm0, %v916_v19  ;;  %328 = vperm.xlu2 %1009, %v254_v35  }
  0x51   : > { %902 = vmatmul.msk.bf16.gmra.mxu3 %vm376_vm0, %v916_v19 }
  0x55   : > { %333 = vperm.xlu0 %1007, %v255_v29  }
  0x5f   : > { %879 = vmatmul.msk.bf16.gmra.mxu0 %vm376_vm0, %v917_v24  ;;  %887 = vmatmul.msk.bf16.gmra.mxu1 %vm376_vm0, %v917_v24 }
  0x60   : > { %895 = vmatmul.msk.bf16.gmra.mxu2 %vm376_vm0, %v917_v24 }
  0x61   : > { %903 = vmatmul.msk.bf16.gmra.mxu3 %vm376_vm0, %v917_v24 }
  0x6f   : > { %880 = vmatmul.msk.bf16.gmra.mxu0 %vm376_vm0, %v918_v27  ;;  %888 = vmatmul.msk.bf16.gmra.mxu1 %vm376_vm0, %v918_v27 }
  0x70   : > { %896 = vmatmul.msk.bf16.gmra.mxu2 %vm376_vm0, %v918_v27 }
  0x71   : > { %904 = vmatmul.msk.bf16.gmra.mxu3 %vm376_vm0, %v918_v27 }
  0x7f   : > { %881 = vmatmul.msk.bf16.gmra.mxu0 %vm376_vm0, %v919_v32  ;;  %889 = vmatmul.msk.bf16.gmra.mxu1 %vm376_vm0, %v919_v32 }
  0x80   : > { %897 = vmatmul.msk.bf16.gmra.mxu2 %vm376_vm0, %v919_v32 }
  0x81   : > { %905 = vmatmul.msk.bf16.gmra.mxu3 %vm376_vm0, %v919_v32 }
  0x8a   : > { %v279_v24 = vpop.permute.xlu2 %278 }
  0x8f   : > { %882 = vmatmul.msk.bf16.gmra.mxu0 %vm376_vm0, %v920_v34  ;;  %890 = vmatmul.msk.bf16.gmra.mxu1 %vm376_vm0, %v920_v34 }
  0x90   : > { %898 = vmatmul.msk.bf16.gmra.mxu2 %vm376_vm0, %v920_v34 }
  0x91   : > { %906 = vmatmul.msk.bf16.gmra.mxu3 %vm376_vm0, %v920_v34 }
  0x9f   : > { %883 = vmatmul.msk.bf16.gmra.mxu0 %vm376_vm0, %v921_v36  ;;  %891 = vmatmul.msk.bf16.gmra.mxu1 %vm376_vm0, %v921_v36  ;;  %v259_v37 = vpop.permute.xlu0 %258 }
  0xa0   : > { %899 = vmatmul.msk.bf16.gmra.mxu2 %vm376_vm0, %v921_v36  ;;  %v269_v58 = vpop.permute.xlu1 %268 }
  0xa1   : > { %907 = vmatmul.msk.bf16.gmra.mxu3 %vm376_vm0, %v921_v36 }
  0xa7   : > { %v264_v45 = vpop.permute.xlu0 %263 }
  0xa8   : > { %v274_v11 = vpop.permute.xlu1 %273 }
  0xac   : > { %v410_v38 = vpop.f32.mrf.mxu0  ;;  %v459_v40 = vpop.f32.mrf.mxu1 }
  0xad   : > { %v411_v39 = vadd.f32 %v410_v38, %v259_v37  ;;  %v460_v41 = vadd.f32 %v459_v40, %v259_v37 }
  0xaf   : > { %v597_v42 = vmax.f32 %v411_v39, 0.0  ;;  %v598_v43 = vmax.f32 %v460_v41, 0.0  ;;  %v284_v41 = vpop.permute.xlu2 %283 }
  0xb1   : > { %v661_v44 = vpack.c.bf16 %v598_v43, %v597_v42 }
  0xb3   : > { %v508_v46 = vpop.f32.mrf.mxu2  ;;  %693 = vst [vmem:[%s1370_s8] sm:$0xff] %v661_v44 }
  0xb4   : > { %v509_v47 = vadd.f32 %v508_v46, %v259_v37  ;;  %v557_v48 = vpop.f32.mrf.mxu3  ;;  %v412_v49 = vpop.f32.mrf.mxu0 }
  0xb5   : > { %v558_v50 = vadd.f32 %v557_v48, %v259_v37  ;;  %v413_v51 = vadd.f32 %v412_v49, %v264_v45  ;;  %v461_v52 = vpop.f32.mrf.mxu1 }
  0xb6   : > { %v599_v53 = vmax.f32 %v509_v47, 0.0  ;;  %v462_v54 = vadd.f32 %v461_v52, %v264_v45 }
  0xb7   : > { %v600_v55 = vmax.f32 %v558_v50, 0.0  ;;  %v601_v56 = vmax.f32 %v413_v51, 0.0 }
  0xb8   : > { %v602_v57 = vmax.f32 %v462_v54, 0.0 }
  0xb9   : > { %v662_v59 = vpack.c.bf16 %v600_v55, %v599_v53 }
  0xba   : > { %v663_v60 = vpack.c.bf16 %v602_v57, %v601_v56  ;;  %v289_v56 = vpop.permute.xlu0 %288 }
  0xbb   : > { %694 = vst [vmem:[%s1370_s8 + $0x8] sm:$0xff] %v662_v59  ;;  %v510_v61 = vpop.f32.mrf.mxu2 }
  0xbc   : > { %695 = vst [vmem:[%s1370_s8 + $0x10] sm:$0xff] %v663_v60  ;;  %v511_v62 = vadd.f32 %v510_v61, %v264_v45  ;;  %v559_v63 = vpop.f32.mrf.mxu3  ;;  %v415_v0 = vpop.f32.mrf.mxu0 }
  0xbd   : > { %v560_v1 = vadd.f32 %v559_v63, %v264_v45  ;;  %v416_v2 = vadd.f32 %v415_v0, %v269_v58  ;;  %v464_v3 = vpop.f32.mrf.mxu1 }
  0xbe   : > { %v603_v4 = vmax.f32 %v511_v62, 0.0  ;;  %v465_v5 = vadd.f32 %v464_v3, %v269_v58 }
  0xbf   : > { %v604_v6 = vmax.f32 %v560_v1, 0.0  ;;  %v605_v7 = vmax.f32 %v416_v2, 0.0 }
  0xc0   : > { %v606_v8 = vmax.f32 %v465_v5, 0.0 }
  0xc1   : > { %v664_v9 = vpack.c.bf16 %v604_v6, %v603_v4 }
  0xc2   : > { %v665_v10 = vpack.c.bf16 %v606_v8, %v605_v7  ;;  %v294_v7 = vpop.permute.xlu1 %293 }
  0xc3   : > { %696 = vst [vmem:[%s1370_s8 + $0x18] sm:$0xff] %v664_v9  ;;  %v513_v12 = vpop.f32.mrf.mxu2 }
  0xc4   : > { %697 = vst [vmem:[%s1370_s8 + $0x20] sm:$0xff] %v665_v10  ;;  %v514_v13 = vadd.f32 %v513_v12, %v269_v58  ;;  %v562_v14 = vpop.f32.mrf.mxu3  ;;  %v417_v15 = vpop.f32.mrf.mxu0 }
  0xc5   : > { %v563_v16 = vadd.f32 %v562_v14, %v269_v58  ;;  %v418_v17 = vadd.f32 %v417_v15, %v274_v11  ;;  %v466_v18 = vpop.f32.mrf.mxu1 }
  0xc6   : > { %v607_v19 = vmax.f32 %v514_v13, 0.0  ;;  %v467_v20 = vadd.f32 %v466_v18, %v274_v11 }
  0xc7   : > { %v608_v21 = vmax.f32 %v563_v16, 0.0  ;;  %v609_v22 = vmax.f32 %v418_v17, 0.0 }
  0xc8   : > { %v610_v23 = vmax.f32 %v467_v20, 0.0 }
  0xc9   : > { %v666_v25 = vpack.c.bf16 %v608_v21, %v607_v19 }
  0xca   : > { %v667_v26 = vpack.c.bf16 %v610_v23, %v609_v22  ;;  %v299_v22 = vpop.permute.xlu2 %298 }
  0xcb   : > { %698 = vst [vmem:[%s1370_s8 + $0x28] sm:$0xff] %v666_v25  ;;  %v515_v27 = vpop.f32.mrf.mxu2 }
  0xcc   : > { %699 = vst [vmem:[%s1370_s8 + $0x30] sm:$0xff] %v667_v26  ;;  %v516_v28 = vadd.f32 %v515_v27, %v274_v11  ;;  %v564_v29 = vpop.f32.mrf.mxu3  ;;  %v420_v30 = vpop.f32.mrf.mxu0 }
  0xcd   : > { %v565_v31 = vadd.f32 %v564_v29, %v274_v11  ;;  %v421_v32 = vadd.f32 %v420_v30, %v279_v24  ;;  %v469_v33 = vpop.f32.mrf.mxu1 }
  0xce   : > { %v611_v34 = vmax.f32 %v516_v28, 0.0  ;;  %v470_v35 = vadd.f32 %v469_v33, %v279_v24 }
  0xcf   : > { %v612_v36 = vmax.f32 %v565_v31, 0.0  ;;  %v613_v37 = vmax.f32 %v421_v32, 0.0 }
  0xd0   : > { %v614_v38 = vmax.f32 %v470_v35, 0.0 }
  0xd1   : > { %v668_v39 = vpack.c.bf16 %v612_v36, %v611_v34 }
  0xd2   : > { %v669_v40 = vpack.c.bf16 %v614_v38, %v613_v37  ;;  %v304_v37 = vpop.permute.xlu0 %303 }
  0xd3   : > { %700 = vst [vmem:[%s1370_s8 + $0x38] sm:$0xff] %v668_v39  ;;  %v518_v42 = vpop.f32.mrf.mxu2 }
  0xd4   : > { %701 = vst [vmem:[%s1370_s8 + $0x40] sm:$0xff] %v669_v40  ;;  %v519_v43 = vadd.f32 %v518_v42, %v279_v24  ;;  %v567_v44 = vpop.f32.mrf.mxu3  ;;  %v422_v45 = vpop.f32.mrf.mxu0 }
  0xd5   : > { %v568_v46 = vadd.f32 %v567_v44, %v279_v24  ;;  %v423_v47 = vadd.f32 %v422_v45, %v284_v41  ;;  %v471_v48 = vpop.f32.mrf.mxu1 }
  0xd6   : > { %v615_v49 = vmax.f32 %v519_v43, 0.0  ;;  %v472_v50 = vadd.f32 %v471_v48, %v284_v41 }
  0xd7   : > { %v616_v51 = vmax.f32 %v568_v46, 0.0  ;;  %v617_v52 = vmax.f32 %v423_v47, 0.0 }
  0xd8   : > { %v618_v53 = vmax.f32 %v472_v50, 0.0 }
  0xd9   : > { %v670_v54 = vpack.c.bf16 %v616_v51, %v615_v49 }
  0xda   : > { %v671_v55 = vpack.c.bf16 %v618_v53, %v617_v52  ;;  %v309_v52 = vpop.permute.xlu1 %308 }
  0xdb   : > { %702 = vst [vmem:[%s1370_s8 + $0x48] sm:$0xff] %v670_v54  ;;  %v520_v57 = vpop.f32.mrf.mxu2 }
  0xdc   : > { %703 = vst [vmem:[%s1370_s8 + $0x50] sm:$0xff] %v671_v55  ;;  %v521_v58 = vadd.f32 %v520_v57, %v284_v41  ;;  %v569_v59 = vpop.f32.mrf.mxu3  ;;  %v425_v60 = vpop.f32.mrf.mxu0 }
  0xdd   : > { %v570_v61 = vadd.f32 %v569_v59, %v284_v41  ;;  %v474_v62 = vpop.f32.mrf.mxu1  ;;  %v426_v63 = vadd.f32 %v425_v60, %v289_v56 }
  0xde   : > { %v619_v0 = vmax.f32 %v521_v58, 0.0  ;;  %v475_v1 = vadd.f32 %v474_v62, %v289_v56 }
  0xdf   : > { %v620_v2 = vmax.f32 %v570_v61, 0.0  ;;  %v621_v3 = vmax.f32 %v426_v63, 0.0 }
  0xe0   : > { %v622_v4 = vmax.f32 %v475_v1, 0.0 }
  0xe1   : > { %v672_v5 = vpack.c.bf16 %v620_v2, %v619_v0 }
  0xe2   : > { %v673_v6 = vpack.c.bf16 %v622_v4, %v621_v3  ;;  %v314_v3 = vpop.permute.xlu2 %313 }
  0xe3   : > { %704 = vst [vmem:[%s1370_s8 + $0x58] sm:$0xff] %v672_v5  ;;  %v523_v8 = vpop.f32.mrf.mxu2 }
  0xe4   : > { %705 = vst [vmem:[%s1370_s8 + $0x60] sm:$0xff] %v673_v6  ;;  %v524_v9 = vadd.f32 %v523_v8, %v289_v56  ;;  %v572_v10 = vpop.f32.mrf.mxu3  ;;  %v427_v11 = vpop.f32.mrf.mxu0 }
  0xe5   : > { %v573_v12 = vadd.f32 %v572_v10, %v289_v56  ;;  %v428_v13 = vadd.f32 %v427_v11, %v294_v7  ;;  %v476_v14 = vpop.f32.mrf.mxu1 }
  0xe6   : > { %v623_v15 = vmax.f32 %v524_v9, 0.0  ;;  %v477_v16 = vadd.f32 %v476_v14, %v294_v7 }
  0xe7   : > { %v624_v17 = vmax.f32 %v573_v12, 0.0  ;;  %v625_v18 = vmax.f32 %v428_v13, 0.0 }
  0xe8   : > { %v626_v19 = vmax.f32 %v477_v16, 0.0 }
  0xe9   : > { %v674_v20 = vpack.c.bf16 %v624_v17, %v623_v15 }
  0xea   : > { %v675_v21 = vpack.c.bf16 %v626_v19, %v625_v18  ;;  %v319_v18 = vpop.permute.xlu0 %318 }
  0xeb   : > { %706 = vst [vmem:[%s1370_s8 + $0x68] sm:$0xff] %v674_v20  ;;  %v525_v23 = vpop.f32.mrf.mxu2 }
  0xec   : > { %707 = vst [vmem:[%s1370_s8 + $0x70] sm:$0xff] %v675_v21  ;;  %v526_v24 = vadd.f32 %v525_v23, %v294_v7  ;;  %v574_v25 = vpop.f32.mrf.mxu3  ;;  %v430_v26 = vpop.f32.mrf.mxu0 }
  0xed   : > { %v575_v27 = vadd.f32 %v574_v25, %v294_v7  ;;  %v479_v28 = vpop.f32.mrf.mxu1  ;;  %v431_v29 = vadd.f32 %v430_v26, %v299_v22 }
  0xee   : > { %v627_v30 = vmax.f32 %v526_v24, 0.0  ;;  %v480_v31 = vadd.f32 %v479_v28, %v299_v22 }
  0xef   : > { %v628_v32 = vmax.f32 %v575_v27, 0.0  ;;  %v629_v33 = vmax.f32 %v431_v29, 0.0 }
  0xf0   : > { %v630_v34 = vmax.f32 %v480_v31, 0.0 }
  0xf1   : > { %v676_v35 = vpack.c.bf16 %v628_v32, %v627_v30 }
  0xf2   : > { %v677_v36 = vpack.c.bf16 %v630_v34, %v629_v33  ;;  %v324_v33 = vpop.permute.xlu1 %323 }
  0xf3   : > { %708 = vst [vmem:[%s1370_s8 + $0x78] sm:$0xff] %v676_v35  ;;  %v528_v38 = vpop.f32.mrf.mxu2 }
  0xf4   : > { %709 = vst [vmem:[%s1370_s8 + $0x80] sm:$0xff] %v677_v36  ;;  %v529_v39 = vadd.f32 %v528_v38, %v299_v22  ;;  %v577_v40 = vpop.f32.mrf.mxu3  ;;  %v432_v41 = vpop.f32.mrf.mxu0 }
  0xf5   : > { %v578_v42 = vadd.f32 %v577_v40, %v299_v22  ;;  %v433_v43 = vadd.f32 %v432_v41, %v304_v37  ;;  %v481_v44 = vpop.f32.mrf.mxu1 }
  0xf6   : > { %v631_v45 = vmax.f32 %v529_v39, 0.0  ;;  %v482_v46 = vadd.f32 %v481_v44, %v304_v37 }
  0xf7   : > { %v632_v47 = vmax.f32 %v578_v42, 0.0  ;;  %v633_v48 = vmax.f32 %v433_v43, 0.0 }
  0xf8   : > { %v634_v49 = vmax.f32 %v482_v46, 0.0 }
  0xf9   : > { %v678_v50 = vpack.c.bf16 %v632_v47, %v631_v45 }
  0xfa   : > { %v679_v51 = vpack.c.bf16 %v634_v49, %v633_v48  ;;  %v329_v48 = vpop.permute.xlu2 %328 }
  0xfb   : > { %710 = vst [vmem:[%s1370_s8 + $0x88] sm:$0xff] %v678_v50  ;;  %v530_v53 = vpop.f32.mrf.mxu2 }
  0xfc   : > { %711 = vst [vmem:[%s1370_s8 + $0x90] sm:$0xff] %v679_v51  ;;  %v531_v54 = vadd.f32 %v530_v53, %v304_v37  ;;  %v579_v55 = vpop.f32.mrf.mxu3  ;;  %v435_v56 = vpop.f32.mrf.mxu0 }
  0xfd   : > { %v580_v57 = vadd.f32 %v579_v55, %v304_v37  ;;  %v484_v58 = vpop.f32.mrf.mxu1  ;;  %v436_v59 = vadd.f32 %v435_v56, %v309_v52 }
  0xfe   : > { %v635_v60 = vmax.f32 %v531_v54, 0.0  ;;  %v485_v61 = vadd.f32 %v484_v58, %v309_v52 }
  0xff   : > { %v636_v62 = vmax.f32 %v580_v57, 0.0  ;;  %v637_v63 = vmax.f32 %v436_v59, 0.0 }
 0x100   : > { %v638_v0 = vmax.f32 %v485_v61, 0.0 }
 0x101   : > { %v680_v1 = vpack.c.bf16 %v636_v62, %v635_v60 }
 0x102   : > { %v681_v2 = vpack.c.bf16 %v638_v0, %v637_v63  ;;  %v334_v63 = vpop.permute.xlu0 %333 }
 0x103   : > { %712 = vst [vmem:[%s1370_s8 + $0x98] sm:$0xff] %v680_v1  ;;  %v533_v4 = vpop.f32.mrf.mxu2 }
 0x104   : > { %713 = vst [vmem:[%s1370_s8 + $0xa0] sm:$0xff] %v681_v2  ;;  %v534_v5 = vadd.f32 %v533_v4, %v309_v52  ;;  %v582_v6 = vpop.f32.mrf.mxu3  ;;  %v437_v7 = vpop.f32.mrf.mxu0 }
 0x105   : > { %v583_v8 = vadd.f32 %v582_v6, %v309_v52  ;;  %v438_v9 = vadd.f32 %v437_v7, %v314_v3  ;;  %v486_v10 = vpop.f32.mrf.mxu1 }
 0x106   : > { %v639_v11 = vmax.f32 %v534_v5, 0.0  ;;  %v487_v12 = vadd.f32 %v486_v10, %v314_v3 }
 0x107   : > { %v640_v13 = vmax.f32 %v583_v8, 0.0  ;;  %v641_v14 = vmax.f32 %v438_v9, 0.0 }
 0x108   : > { %v642_v15 = vmax.f32 %v487_v12, 0.0 }
 0x109   : > { %v682_v16 = vpack.c.bf16 %v640_v13, %v639_v11 }
 0x10a   : > { %v683_v17 = vpack.c.bf16 %v642_v15, %v641_v14 }
 0x10b   : > { %714 = vst [vmem:[%s1370_s8 + $0xa8] sm:$0xff] %v682_v16  ;;  %v535_v19 = vpop.f32.mrf.mxu2 }
 0x10c   : > { %715 = vst [vmem:[%s1370_s8 + $0xb0] sm:$0xff] %v683_v17  ;;  %v536_v20 = vadd.f32 %v535_v19, %v314_v3  ;;  %v584_v21 = vpop.f32.mrf.mxu3  ;;  %v440_v22 = vpop.f32.mrf.mxu0 }
 0x10d   : > { %v585_v23 = vadd.f32 %v584_v21, %v314_v3  ;;  %v441_v24 = vadd.f32 %v440_v22, %v319_v18  ;;  %v489_v25 = vpop.f32.mrf.mxu1 }
 0x10e   : > { %v643_v26 = vmax.f32 %v536_v20, 0.0  ;;  %v490_v27 = vadd.f32 %v489_v25, %v319_v18 }
 0x10f   : > { %v644_v28 = vmax.f32 %v585_v23, 0.0  ;;  %v645_v29 = vmax.f32 %v441_v24, 0.0 }
 0x110   : > { %v646_v30 = vmax.f32 %v490_v27, 0.0 }
 0x111   : > { %v684_v31 = vpack.c.bf16 %v644_v28, %v643_v26 }
 0x112   : > { %v685_v32 = vpack.c.bf16 %v646_v30, %v645_v29 }
 0x113   : > { %716 = vst [vmem:[%s1370_s8 + $0xb8] sm:$0xff] %v684_v31  ;;  %v538_v34 = vpop.f32.mrf.mxu2 }
 0x114   : > { %717 = vst [vmem:[%s1370_s8 + $0xc0] sm:$0xff] %v685_v32  ;;  %v539_v35 = vadd.f32 %v538_v34, %v319_v18  ;;  %v587_v36 = vpop.f32.mrf.mxu3  ;;  %v442_v37 = vpop.f32.mrf.mxu0 }
 0x115   : > { %v588_v38 = vadd.f32 %v587_v36, %v319_v18  ;;  %v443_v39 = vadd.f32 %v442_v37, %v324_v33  ;;  %v491_v40 = vpop.f32.mrf.mxu1 }
 0x116   : > { %v647_v41 = vmax.f32 %v539_v35, 0.0  ;;  %v492_v42 = vadd.f32 %v491_v40, %v324_v33 }
 0x117   : > { %v648_v43 = vmax.f32 %v588_v38, 0.0  ;;  %v649_v44 = vmax.f32 %v443_v39, 0.0 }
 0x118   : > { %v650_v45 = vmax.f32 %v492_v42, 0.0 }
 0x119   : > { %v686_v46 = vpack.c.bf16 %v648_v43, %v647_v41 }
 0x11a   : > { %v687_v47 = vpack.c.bf16 %v650_v45, %v649_v44 }
 0x11b   : > { %718 = vst [vmem:[%s1370_s8 + $0xc8] sm:$0xff] %v686_v46  ;;  %v540_v49 = vpop.f32.mrf.mxu2 }
 0x11c   : > { %719 = vst [vmem:[%s1370_s8 + $0xd0] sm:$0xff] %v687_v47  ;;  %v541_v50 = vadd.f32 %v540_v49, %v324_v33  ;;  %v589_v51 = vpop.f32.mrf.mxu3  ;;  %v445_v52 = vpop.f32.mrf.mxu0 }
 0x11d   : > { %v590_v53 = vadd.f32 %v589_v51, %v324_v33  ;;  %v446_v54 = vadd.f32 %v445_v52, %v329_v48  ;;  %v494_v55 = vpop.f32.mrf.mxu1 }
 0x11e   : > { %v651_v56 = vmax.f32 %v541_v50, 0.0  ;;  %v495_v57 = vadd.f32 %v494_v55, %v329_v48 }
 0x11f   : > { %v652_v58 = vmax.f32 %v590_v53, 0.0  ;;  %v653_v59 = vmax.f32 %v446_v54, 0.0 }
 0x120   : > { %v654_v60 = vmax.f32 %v495_v57, 0.0 }
 0x121   : > { %v688_v61 = vpack.c.bf16 %v652_v58, %v651_v56 }
 0x122   : > { %v689_v62 = vpack.c.bf16 %v654_v60, %v653_v59 }
 0x123   : > { %720 = vst [vmem:[%s1370_s8 + $0xd8] sm:$0xff] %v688_v61  ;;  %v543_v0 = vpop.f32.mrf.mxu2 }
 0x124   : > { %721 = vst [vmem:[%s1370_s8 + $0xe0] sm:$0xff] %v689_v62  ;;  %v544_v1 = vadd.f32 %v543_v0, %v329_v48  ;;  %v592_v2 = vpop.f32.mrf.mxu3  ;;  %v447_v3 = vpop.f32.mrf.mxu0 }
 0x125   : > { %v593_v4 = vadd.f32 %v592_v2, %v329_v48  ;;  %v448_v5 = vadd.f32 %v447_v3, %v334_v63  ;;  %v496_v6 = vpop.f32.mrf.mxu1 }
 0x126   : > { %v655_v7 = vmax.f32 %v544_v1, 0.0  ;;  %v497_v8 = vadd.f32 %v496_v6, %v334_v63 }
 0x127   : > { %v656_v9 = vmax.f32 %v593_v4, 0.0  ;;  %v657_v10 = vmax.f32 %v448_v5, 0.0 }
 0x128   : > { %v658_v11 = vmax.f32 %v497_v8, 0.0 }
 0x129   : > { %v690_v12 = vpack.c.bf16 %v656_v9, %v655_v7 }
 0x12a   : > { %v691_v13 = vpack.c.bf16 %v658_v11, %v657_v10 }
 0x12b   : > { %722 = vst [vmem:[%s1370_s8 + $0xe8] sm:$0xff] %v690_v12  ;;  %v545_v14 = vpop.f32.mrf.mxu2 }
 0x12c   : > { %723 = vst [vmem:[%s1370_s8 + $0xf0] sm:$0xff] %v691_v13  ;;  %v546_v15 = vadd.f32 %v545_v14, %v334_v63  ;;  %v594_v16 = vpop.f32.mrf.mxu3 }
 0x12d   : > { %v595_v17 = vadd.f32 %v594_v16, %v334_v63 }
 0x12e   : > { %v659_v18 = vmax.f32 %v546_v15, 0.0 }
 0x12f   : > { %v660_v19 = vmax.f32 %v595_v17, 0.0 }
 0x131   : > { %v692_v20 = vpack.c.bf16 %v660_v19, %v659_v18 }
 0x133   : > { %724 = vst [vmem:[%s1370_s8 + $0xf8] sm:$0xff] %v692_v20 }
 0x134   : > { %1067 = shalt.err (!%p1064_p11)
}
 0x135   : > { %s1144_s7 = smov 256   ;;  %s1145_s26 = smov 512  }
 0x136   : > { %s1146_s8 = smov 16  }
 0x137   : > { %924 = dma.vmem_to_hbm [thread:$0]  (%p1232_p9), %s741_s5, 4096, %s743_s6, %s726_s10, %s1144_s7, %s1145_s26, %s1146_s8  }
 0x138 PF: > { %p935_p13 = scmp.ge.s32.totalorder %s1138_s19, 2  ;;  %s757_s9 = sand.u32 1, %s1110_s12  }
 0x139   : > { %s758_s17 = scalar_lea.sflag [#allocation4], %s757_s9 }
 0x13a   : > { %p931_p0 = pnand %p935_p13, %p1238_p12 }
 0x13c   : > { %p932_p1 = pneg %p931_p0 }
 0x13e   : > { %1105 = dma.done.wait (%p932_p1), %s758_s17, 4096  }
 0x13f   : > { %1107 = vsyncadd (%p932_p1), %s758_s17, 4294963200  ;;  %s19_s19 = sadd.s32 1, %s1138_s19   ;;  %s1464_s22 = sld [smem:[#allocation11_spill]] }
 0x140   : > { %p16_p2 = scmp.ge.s32.totalorder %s19_s19, 6   ;;  %s1465_s15 = sld [smem:[#allocation8_spill]] }
 0x141   : > { %s1466_s17 = sld [smem:[#allocation9_spill]]  ;;  %s1468_s12 = smov %s1114_s13 }
 0x142   : > { %s1467_s28 = sld [smem:[#allocation10_spill]]  ;;  %s1469_s13 = smov %s1118_s14 }
 0x143   : > { %s1471_s16 = smov %s1134_s18 }
 0x144   :  { %18 = sbr.rel (!%p16_p2) target bundleno = 7 (0x7), region = 77 }
 0x145   : > { %s1470_s14 = smov %s1464_s22 }
 0x148   : > { %s1472_s18 = smov %s1467_s28 }
 0x149   :  { %764 = vsyncpa [#allocation3], 1 }
 0x14a   :  { %766 = vsyncpa [#allocation3 + $0x1], 1 }
 0x14b   :  { %767 = vsyncpa [#allocation4], 1 }
 0x14c   :  { %769 = vsyncpa [#allocation4 + $0x1], 1 }

</bundles_post_ra>
